<compile_context>
chip_gen: v7x
topology: tpu7x:2x2x1
jax: 0.10.0
libtpu: 0.0.40
codegen_flags: <defaults>
</compile_context>

<pallas_src>
import jax
import jax.numpy as jnp
from jax.experimental import pallas as pl
from jax.experimental.pallas import tpu as pltpu


def _round_up(v, m):
    return ((v + m - 1) // m) * m


def _head_kernel_resident(x_ref, w1_ref, b1_ref, w2_ref, b2_ref, o_ref):
    # x_ref:  [TB, H]    CLS-token features tile (cast to matmul dtype here)
    # w1_ref: [H, H]     dense weight, pre-transposed (x @ W), resident
    # b1_ref: [1, H]     dense bias (f32)
    # w2_ref: [H, Lpad]  out_proj weight, pre-transposed + lane-padded
    # b2_ref: [1, Lpad]  out_proj bias (f32, lane-padded)
    # o_ref:  [TB, Lpad]
    # NOTE: dropout is identity in eval mode (inference forward pass).
    x = x_ref[...].astype(w1_ref.dtype)
    h = jnp.dot(x, w1_ref[...], preferred_element_type=jnp.float32)
    h = jnp.tanh(h + b1_ref[...])              # f32 bias + tanh (all gens)
    out = jnp.dot(h.astype(w2_ref.dtype), w2_ref[...],
                  preferred_element_type=jnp.float32)
    o_ref[...] = (out + b2_ref[...]).astype(o_ref.dtype)


def _head_kernel_ktiled(x_ref, w1_ref, b1_ref, w2_ref, b2_ref, o_ref, acc_ref):
    # Hidden dim tiled in TK-wide chunks (grid axis 1, "arbitrary"):
    #   h_k = tanh(x @ W1[:, k*TK:(k+1)*TK] + b1[k])        # [TB, TK]
    #   acc += h_k @ W2[k*TK:(k+1)*TK, :]                   # [TB, Lpad]
    # Streams W1/W2 chunk-by-chunk so weight DMA overlaps previous chunk's
    # matmul+tanh; bounds VMEM by TK instead of H.
    k = pl.program_id(1)

    @pl.when(k == 0)
    def _():
        acc_ref[...] = jnp.zeros_like(acc_ref)

    x = x_ref[...].astype(w1_ref.dtype)
    h = jnp.dot(x, w1_ref[...], preferred_element_type=jnp.float32)
    h = jnp.tanh(h + b1_ref[...])
    acc_ref[...] += jnp.dot(h.astype(w2_ref.dtype), w2_ref[...],
                            preferred_element_type=jnp.float32)

    @pl.when(k == pl.num_programs(1) - 1)
    def _():
        o_ref[...] = (acc_ref[...] + b2_ref[...]).astype(o_ref.dtype)


def sequence_classification_head(features, w_dense, b_dense, w_out, b_out,
                                 *, param_dtype=jnp.bfloat16, tb=256,
                                 slice_output=True):
    """Inference forward of SequenceClassificationHead.

    features: [B, S, H].
    Weights are PRE-TRANSPOSED relative to PyTorch nn.Linear:
        w_dense: [H, H]  (kernel computes x @ w_dense)
        w_out:   [H, L]  (kernel computes h @ w_out)
    Passing raw PyTorch [out, in] weights silently gives wrong logits.

    param_dtype: matmul dtype (default bf16; f32 accumulation/bias/tanh kept).
    slice_output=False returns the lane-padded [B, 128*ceil(L/128)] logits
    (skips the post-kernel slice for consumers that can handle padding).
    """
    B, S, H = features.shape
    assert w_dense.shape == (H, H), w_dense.shape
    assert b_dense.shape == (H,), b_dense.shape
    assert w_out.shape[0] == H, w_out.shape
    L = w_out.shape[1]
    assert b_out.shape == (L,), b_out.shape
    out_dtype = features.dtype

    mm_dtype = features.dtype if param_dtype is None else param_dtype
    w1 = w_dense.astype(mm_dtype)
    w2 = w_out.astype(mm_dtype)

    # Biases stay f32 regardless of matmul dtype.
    b1 = b_dense.astype(jnp.float32).reshape(1, H)

    # Pad label dim to a lane-dense multiple of 128 (unmasked stores,
    # full MXU columns on the second matmul).
    Lpad = _round_up(max(L, 1), 128)
    w2p = jnp.zeros((H, Lpad), dtype=w2.dtype).at[:, :L].set(w2)
    b2p = jnp.zeros((1, Lpad), dtype=jnp.float32).at[:, :L].set(
        b_out.astype(jnp.float32))

    # Batch tile: multiple of 8 sublanes, sized so the grid has >= 2
    # "parallel" steps whenever B > 8 (keeps v7x's second TC busy), capped
    # at `tb` (256 = v6e/v7x MXU height).  No batch padding: cdiv grid with
    # a masked partial last block.
    TB = max(8, min(tb, _round_up(pl.cdiv(B, 2), 8)))
    nb = pl.cdiv(B, TB)

    # CLS-token extraction: fuse into the kernel when H is lane-aligned.
    fuse_cls = (H % 128 == 0)
    if fuse_cls:
        # Free row-major reshape; the x BlockSpec reads only the first H
        # lanes of each [S*H] row, i.e. features[:, 0, :], straight from HBM.
        # Cast to mm_dtype happens IN-kernel (casting here would copy the
        # whole features tensor).
        x = features.reshape(B, S * H)
    else:
        # TODO(synk): fuse CLS extraction for non-128-aligned H once Mosaic
        # accepts a squeezed sequence dim; plain-JAX slice fallback for now.
        x = features[:, 0, :]

    # Choose hidden-dim tile TK (multiple of 128) if the k-tiled variant is
    # applicable/beneficial.
    w_bytes = jnp.dtype(mm_dtype).itemsize
    resident_w_vmem = 2 * (H * H + H * Lpad) * w_bytes   # double-buffered
    TK, n_k = 0, 0
    if H % 128 == 0:
        for cand in (512, 256, 128):
            if H % cand == 0 and H // cand >= 2:
                TK, n_k = cand, H // cand
                break
    # k-tiled when the batch grid is too short to hide the weight DMA, or
    # when resident weights would threaten v7x's 64 MiB VMEM.
    use_ktiled = (TK > 0) and (nb <= 2 or resident_w_vmem > 24 * (1 << 20))

    x_bytes = jnp.dtype(features.dtype).itemsize
    o_bytes = jnp.dtype(out_dtype).itemsize
    w_passes = nb if use_ktiled else 1
    cost = pl.CostEstimate(
        flops=2 * B * H * H + 2 * B * H * Lpad,
        transcendentals=B * H,
        bytes_accessed=(B * H * x_bytes
                        + (H * H + H * Lpad) * w_bytes * w_passes
                        + (H + Lpad) * 4
                        + B * Lpad * o_bytes),
    )

    if use_ktiled:
        out = pl.pallas_call(
            _head_kernel_ktiled,
            out_shape=jax.ShapeDtypeStruct((B, Lpad), out_dtype),
            grid=(nb, n_k),
            in_specs=[
                pl.BlockSpec((TB, H), lambda i, k: (i, 0)),      # x tile
                pl.BlockSpec((H, TK), lambda i, k: (0, k)),      # W1 chunk
                pl.BlockSpec((1, TK), lambda i, k: (0, k)),      # b1 chunk
                pl.BlockSpec((TK, Lpad), lambda i, k: (k, 0)),   # W2 chunk
                pl.BlockSpec((1, Lpad), lambda i, k: (0, 0)),    # b2 resident
            ],
            out_specs=pl.BlockSpec((TB, Lpad), lambda i, k: (i, 0)),
            scratch_shapes=[pltpu.VMEM((TB, Lpad), jnp.float32)],
            compiler_params=pltpu.CompilerParams(
                dimension_semantics=("parallel", "arbitrary")),
            cost_estimate=cost,
        )(x, w1, b1, w2p, b2p)
    else:
        cp_kwargs = {}
        est_vmem = (2 * TB * H * x_bytes + resident_w_vmem
                    + 2 * TB * Lpad * o_bytes + 4 * (H + Lpad) * 4)
        if est_vmem > 28 * (1 << 20):
            # Large resident weights (only hit for big H with a long batch
            # grid and no 128-aligned TK): raise the scoped VMEM limit,
            # staying under v7x's 64 MiB physical VMEM.
            cp_kwargs["vmem_limit_bytes"] = min(int(est_vmem * 3 // 2),
                                                60 * (1 << 20))
        out = pl.pallas_call(
            _head_kernel_resident,
            out_shape=jax.ShapeDtypeStruct((B, Lpad), out_dtype),
            grid=(nb,),
            in_specs=[
                pl.BlockSpec((TB, H), lambda i: (i, 0)),      # x tile streams
                pl.BlockSpec((H, H), lambda i: (0, 0)),       # W1 resident
                pl.BlockSpec((1, H), lambda i: (0, 0)),       # b1 resident
                pl.BlockSpec((H, Lpad), lambda i: (0, 0)),    # W2 resident
                pl.BlockSpec((1, Lpad), lambda i: (0, 0)),    # b2 resident
            ],
            out_specs=pl.BlockSpec((TB, Lpad), lambda i: (i, 0)),
            compiler_params=pltpu.CompilerParams(
                dimension_semantics=("parallel",), **cp_kwargs),
            cost_estimate=cost,
        )(x, w1, b1, w2p, b2p)

    if slice_output:
        return out[:, :L]
    return out


if __name__ == "__main__":
    key = jax.random.PRNGKey(0)

    def make_inputs(k, B, S, H, L):
        k_feat, k_w1, k_b1, k_w2, k_b2 = jax.random.split(k, 5)
        features = jax.random.normal(k_feat, (B, S, H), dtype=jnp.float32)
        # PyTorch Linear-style uniform init, stored pre-transposed so the
        # kernel computes x @ W directly.
        bound = 1.0 / (H ** 0.5)
        w_dense = jax.random.uniform(k_w1, (H, H), jnp.float32, -bound, bound)
        b_dense = jax.random.uniform(k_b1, (H,), jnp.float32, -bound, bound)
        w_out = jax.random.uniform(k_w2, (H, L), jnp.float32, -bound, bound)
        b_out = jax.random.uniform(k_b2, (L,), jnp.float32, -bound, bound)
        return features, w_dense, b_dense, w_out, b_out

    def reference(features, w_dense, b_dense, w_out, b_out):
        x_cls = features[:, 0, :]                 # eval-mode dropout == id
        return jnp.tanh(x_cls @ w_dense + b_dense) @ w_out + b_out

    cases = [
        (2, 8, 128, 4),    # fused-CLS, resident-weight path (H % 128 == 0)
        (2, 4, 256, 5),    # fused-CLS, k-tiled path (2 hidden chunks)
        (2, 8, 32, 4),     # fallback path (H not lane-aligned)
        (18, 4, 128, 3),   # multi-step batch grid with masked last block
    ]

    for idx, (B, S, H, L) in enumerate(cases):
        key, sub = jax.random.split(key)
        args = make_inputs(sub, B, S, H, L)
        ref = reference(*args)

        # f32 matmul path: tight tolerance.
        logits_f32 = sequence_classification_head(*args,
                                                  param_dtype=jnp.float32)
        jax.block_until_ready(logits_f32)
        assert logits_f32.shape == (B, L), (idx, logits_f32.shape)
        assert jnp.allclose(logits_f32, ref, atol=1e-4, rtol=1e-4), idx

        # Default bf16 matmul path (f32 accumulation/bias/tanh): looser tol.
        logits_bf16 = sequence_classification_head(*args)
        jax.block_until_ready(logits_bf16)
        assert logits_bf16.shape == (B, L), (idx, logits_bf16.shape)
        assert jnp.allclose(logits_bf16, ref, atol=5e-2, rtol=5e-2), idx

    print("KERNEL_OK")
</pallas_src>

<mosaic_0001>
module attributes {stable_mosaic.version = 11 : i64} {
  func.func @_head_kernel_resident(%arg0: i32, %arg1: memref<8x128xf32, #tpu.memory_space<vmem>>, %arg2: memref<128x128xf32, #tpu.memory_space<vmem>>, %arg3: memref<1x128xf32, #tpu.memory_space<vmem>>, %arg4: memref<128x128xf32, #tpu.memory_space<vmem>>, %arg5: memref<1x128xf32, #tpu.memory_space<vmem>>, %arg6: memref<8x128xf32, #tpu.memory_space<vmem>>) attributes {dimension_semantics = [#tpu.dimension_semantics<parallel>], iteration_bounds = array<i64: 1>, scalar_prefetch = 0 : i64, scratch_operands = 0 : i64, tpu.core_type = #tpu.core_type<tc>, window_params = [{transform_indices = @transform_0, window_bounds = array<i64: 8, 128>}, {pipeline_mode = #tpu.pipeline_mode<synchronous>, transform_indices = @transform_1, window_bounds = array<i64: 128, 128>}, {pipeline_mode = #tpu.pipeline_mode<synchronous>, transform_indices = @transform_2, window_bounds = array<i64: 1, 128>}, {pipeline_mode = #tpu.pipeline_mode<synchronous>, transform_indices = @transform_3, window_bounds = array<i64: 128, 128>}, {pipeline_mode = #tpu.pipeline_mode<synchronous>, transform_indices = @transform_4, window_bounds = array<i64: 1, 128>}, {transform_indices = @transform_5, window_bounds = array<i64: 8, 128>}]} {
    %c0 = arith.constant 0 : index
    %c0_0 = arith.constant 0 : index
    %0 = vector.load %arg1[%c0, %c0_0] : memref<8x128xf32, #tpu.memory_space<vmem>>, vector<8x128xf32>
    %c0_1 = arith.constant 0 : index
    %c0_2 = arith.constant 0 : index
    %1 = vector.load %arg2[%c0_1, %c0_2] : memref<128x128xf32, #tpu.memory_space<vmem>>, vector<128x128xf32>
    %cst = arith.constant dense<0.000000e+00> : vector<8x128xf32>
    %2 = tpu.matmul %0, %1, %cst {dimension_numbers = #tpu.dot_dimension_numbers<[1], [0], [0], [1], [0, 0, 1, 1], [], []>} : vector<8x128xf32>, vector<128x128xf32>, vector<8x128xf32> -> vector<8x128xf32>
    %c0_3 = arith.constant 0 : index
    %c0_4 = arith.constant 0 : index
    %3 = vector.load %arg3[%c0_3, %c0_4] : memref<1x128xf32, #tpu.memory_space<vmem>>, vector<1x128xf32>
    %4 = vector.broadcast %3 : vector<1x128xf32> to vector<8x128xf32>
    %5 = arith.addf %2, %4 : vector<8x128xf32>
    %6 = math.tanh %5 : vector<8x128xf32>
    %c0_5 = arith.constant 0 : index
    %c0_6 = arith.constant 0 : index
    %7 = vector.load %arg4[%c0_5, %c0_6] : memref<128x128xf32, #tpu.memory_space<vmem>>, vector<128x128xf32>
    %cst_7 = arith.constant dense<0.000000e+00> : vector<8x128xf32>
    %8 = tpu.matmul %6, %7, %cst_7 {dimension_numbers = #tpu.dot_dimension_numbers<[1], [0], [0], [1], [0, 0, 1, 1], [], []>} : vector<8x128xf32>, vector<128x128xf32>, vector<8x128xf32> -> vector<8x128xf32>
    %c0_8 = arith.constant 0 : index
    %c0_9 = arith.constant 0 : index
    %9 = vector.load %arg5[%c0_8, %c0_9] : memref<1x128xf32, #tpu.memory_space<vmem>>, vector<1x128xf32>
    %10 = vector.broadcast %9 : vector<1x128xf32> to vector<8x128xf32>
    %11 = arith.addf %8, %10 : vector<8x128xf32>
    %c0_10 = arith.constant 0 : index
    %c0_11 = arith.constant 0 : index
    %12 = vector.load %arg6[%c0_10, %c0_11] : memref<8x128xf32, #tpu.memory_space<vmem>>, vector<8x128xf32>
    tpu.vector_store %arg6[%c0_10, %c0_11], %11 {strides = array<i32>} : memref<8x128xf32, #tpu.memory_space<vmem>>, vector<8x128xf32>,
    return
  }
  func.func @transform_0(%arg0: i32) -> (i32, i32) {
    %c0_i32 = arith.constant 0 : i32
    %c0_i32_0 = arith.constant 0 : i32
    return %arg0, %c0_i32 : i32, i32
  }
  func.func @transform_1(%arg0: i32) -> (i32, i32) {
    %c0_i32 = arith.constant 0 : i32
    %c0_i32_0 = arith.constant 0 : i32
    %c0_i32_1 = arith.constant 0 : i32
    return %c0_i32, %c0_i32_0 : i32, i32
  }
  func.func @transform_2(%arg0: i32) -> (i32, i32) {
    %c0_i32 = arith.constant 0 : i32
    %c0_i32_0 = arith.constant 0 : i32
    %c0_i32_1 = arith.constant 0 : i32
    return %c0_i32, %c0_i32_0 : i32, i32
  }
  func.func @transform_3(%arg0: i32) -> (i32, i32) {
    %c0_i32 = arith.constant 0 : i32
    %c0_i32_0 = arith.constant 0 : i32
    %c0_i32_1 = arith.constant 0 : i32
    return %c0_i32, %c0_i32_0 : i32, i32
  }
  func.func @transform_4(%arg0: i32) -> (i32, i32) {
    %c0_i32 = arith.constant 0 : i32
    %c0_i32_0 = arith.constant 0 : i32
    %c0_i32_1 = arith.constant 0 : i32
    return %c0_i32, %c0_i32_0 : i32, i32
  }
  func.func @transform_5(%arg0: i32) -> (i32, i32) {
    %c0_i32 = arith.constant 0 : i32
    %c0_i32_0 = arith.constant 0 : i32
    return %arg0, %c0_i32 : i32, i32
  }
}

</mosaic_0001>

<bundles_post_ra>
// kernel: tpu_custom_call.1
= control target key start
LH: loop header
LB: loop body
LE: loop exit
PB: predicated region body
PF: predicated region fallthrough
CT: control target
= control target key end

     0   :  { %10 = vsyncpa [#allocation3], 0  ;;  %s657_s0 = inlined_call_operand.hbm [shape: f32[2,1024], index: 0, kind: input, shape index: {}]   ;;  %s658_s1 = inlined_call_operand.hbm [shape: f32[128,128], index: 1, kind: input, shape index: {}]   ;;  %s659_s2 = inlined_call_operand.vmem [shape: f32[1,128], index: 2, kind: input, shape index: {}]   ;;  %s660_s3 = inlined_call_operand.hbm [shape: f32[128,128], index: 3, kind: input, shape index: {}]   ;;  %s661_s4 = inlined_call_operand.vmem [shape: f32[1,128], index: 4, kind: input, shape index: {}]   ;;  %s662_s5 = inlined_call_operand.hbm [shape: f32[2,128], index: 5, kind: output, shape index: {}]  }
   0x1   :  { %11 = vsyncpa [#allocation6], 0 }
   0x2   :  { %12 = vsyncpa [#allocation4], 0 }
   0x3   :  { %17 = vsyncadd [#allocation3], 96  ;;  %s531_s18 = smov [#allocation5]   ;;  %s437_s22 = scalar_lea.hbm %s658_s1, 2048 }
   0x4   :  { %s30_s19 = sshll.u32 %s531_s18, 4  ;;  %p438_p0 = scmp.ne.s32.totalorder %s658_s1, %s437_s22  ;;  %s31_s19 = int_to_ptr.vmem [resolvable:$true] %s30_s19 }
   0x5   :  { %p441_p1 = scmp.lt.u32.totalorder %s437_s22, %s658_s1 }
   0x7   :  { %p443_p2 = pnand %p441_p1, %p438_p0 }
   0x9   :  { %446 = shalt.err (!%p443_p2)
}
   0xa   :  { %s447_s27 = scalar_lea.vmem %s31_s19, 2048  ;;  %p452_p4 = scmp.lt.s32.totalorder %s31_s19, %s31_s19 }
   0xb   :  { %p448_p3 = scmp.ne.s32.totalorder %s31_s19, %s447_s27  ;;  %p453_p5 = scmp.lt.s32.totalorder %s447_s27, %s447_s27 }
   0xd   :  { %p454_p6 = por %p453_p5, %p452_p4 }
   0xf   :  { %p455_p7 = pnand %p454_p6, %p448_p3 }
  0x11   :  { %458 = shalt.err (!%p455_p7)
}
  0x12   :  { %s532_s28 = smov 128   ;;  %s533_s29 = smov 8  }
  0x13   :  { %36 = dma.hbm_to_vmem [thread:$0]  %s658_s1, 2048, %s31_s19, [#allocation6], %s532_s28, %s532_s28, %s533_s29  }
  0x14   :  { %s534_s7 = smov [#allocation2]   ;;  %s459_s11 = scalar_lea.hbm %s657_s0, 32 }
  0x15   :  { %s18_s8 = sshll.u32 %s534_s7, 4  ;;  %p460_p8 = scmp.ne.s32.totalorder %s657_s0, %s459_s11  ;;  %s19_s8 = int_to_ptr.vmem [resolvable:$true] %s18_s8 }
  0x16   :  { %s461_s16 = scalar_lea.hbm %s657_s0, 256  ;;  %p463_p10 = scmp.lt.u32.totalorder %s459_s11, %s657_s0 }
  0x17   :  { %p462_p9 = scmp.lt.u32.totalorder %s461_s16, %s459_s11 }
  0x19   :  { %p464_p11 = por %p463_p10, %p462_p9 }
  0x1b   :  { %p465_p12 = pnand %p464_p11, %p460_p8 }
  0x1d   :  { %468 = shalt.err (!%p465_p12)
}
  0x1e   :  { %s469_s1 = scalar_lea.vmem %s19_s8, 32  ;;  %s473_s19 = scalar_lea.vmem %s19_s8, 128 }
  0x1f   :  { %p470_p13 = scmp.ne.s32.totalorder %s19_s8, %s469_s1  ;;  %p474_p0 = scmp.lt.s32.totalorder %s19_s8, %s19_s8 }
  0x20   :  { %p475_p1 = scmp.lt.s32.totalorder %s473_s19, %s469_s1 }
  0x22   :  { %p476_p2 = por %p475_p1, %p474_p0 }
  0x24   :  { %p477_p3 = pnand %p476_p2, %p470_p13 }
  0x26   :  { %480 = shalt.err (!%p477_p3)
}
  0x27   :  { %s535_s20 = smov 256   ;;  %s536_s21 = smov 32  }
  0x28   :  { %s537_s22 = smov 2   ;;  %s538_s25 = smov [#allocation7]  }
  0x29   :  { %24 = dma.hbm_to_vmem [thread:$0]  %s657_s0, 32, %s19_s8, [#allocation3], %s535_s20, %s536_s21, %s537_s22  }
  0x2a   :  { %s44_s26 = sshll.u32 %s538_s25, 4  ;;  %s481_s6 = scalar_lea.hbm %s660_s3, 2048  ;;  %s45_s26 = int_to_ptr.vmem [resolvable:$true] %s44_s26 }
  0x2b   :  { %p482_p4 = scmp.ne.s32.totalorder %s660_s3, %s481_s6  ;;  %p485_p5 = scmp.lt.u32.totalorder %s481_s6, %s660_s3 }
  0x2d   :  { %p487_p6 = pnand %p485_p5, %p482_p4 }
  0x2f   :  { %490 = shalt.err (!%p487_p6)
}
  0x30   :  { %s491_s12 = scalar_lea.vmem %s45_s26, 2048  ;;  %p496_p8 = scmp.lt.s32.totalorder %s45_s26, %s45_s26 }
  0x31   :  { %p492_p7 = scmp.ne.s32.totalorder %s45_s26, %s491_s12  ;;  %p497_p9 = scmp.lt.s32.totalorder %s491_s12, %s491_s12 }
  0x33   :  { %p498_p10 = por %p497_p9, %p496_p8 }
  0x35   :  { %p499_p11 = pnand %p498_p10, %p492_p7 }
  0x37   :  { %502 = shalt.err (!%p499_p11)
}
  0x38   :  { %50 = dma.hbm_to_vmem [thread:$0]  %s660_s3, 2048, %s45_s26, [#allocation6], %s532_s28, %s532_s28, %s533_s29  }
  0x39   :  { %525 = dma.done.wait [#allocation3], 128  }
  0x3a   :  { %526 = vsyncadd [#allocation3], 4294967168 }
  0x3b   :  { %527 = dma.done.wait [#allocation6], 4096  }
  0x3c   :  { %528 = vsyncadd [#allocation6], 4294963200  ;;  %v539_v0 = vmov 0.0|0.0   ;;  %vm540_vm0 = vmmov 0   ;;  %v541_v1 = vmov 0.0   ;;  %v63_v2 = vld [vmem:[#allocation5] sm:$0xff] }
  0x3d   :  { %375 = vmatprep.subr.bf16.mxu0 %v539_v0  ;;  %337 = vmatprep.mubr.msk.f32.mxu0 %vm540_vm0, %v541_v1  ;;  %v64_v3 = vld [vmem:[#allocation5 + $0x8] sm:$0xff]  ;;  %v65_v4 = vld [vmem:[#allocation5 + $0x10] sm:$0xff]  ;;  %v66_v6 = vld [vmem:[#allocation5 + $0x18] sm:$0xff] }
  0x3e   :  { %399 = vmatprep.subr.bf16.mxu1 %v539_v0  ;;  %372 = vmatprep.mubr.msk.f32.mxu1 %vm540_vm0, %v541_v1  ;;  %v376_v5 = vpack.c.bf16 %v64_v3, %v63_v2  ;;  %v379_v7 = vpack.c.bf16 %v66_v6, %v65_v4  ;;  %v67_v8 = vld [vmem:[#allocation5 + $0x20] sm:$0xff]  ;;  %v68_v9 = vld [vmem:[#allocation5 + $0x28] sm:$0xff]  ;;  %v159_v12 = vld [vmem:[#allocation7 + $0x10] sm:$0xff] }
  0x3f   :  { %v157_v10 = vld [vmem:[#allocation7] sm:$0xff]  ;;  %v158_v11 = vld [vmem:[#allocation7 + $0x8] sm:$0xff]  ;;  %v160_v13 = vld [vmem:[#allocation7 + $0x18] sm:$0xff]  ;;  %v382_v14 = vpack.c.bf16 %v68_v9, %v67_v8 }
  0x40   :  { %377 = vmatpush3.bf16.msra.mxu0 %v376_v5  ;;  %v400_v15 = vpack.c.bf16 %v158_v11, %v157_v10  ;;  %v69_v16 = vld [vmem:[#allocation5 + $0x30] sm:$0xff]  ;;  %v70_v17 = vld [vmem:[#allocation5 + $0x38] sm:$0xff]  ;;  %v403_v18 = vpack.c.bf16 %v160_v13, %v159_v12  ;;  %v161_v19 = vld [vmem:[#allocation7 + $0x20] sm:$0xff] }
  0x41   :  { %378 = vmatprep.subr.bf16.mxu0 %v539_v0  ;;  %v162_v20 = vld [vmem:[#allocation7 + $0x28] sm:$0xff]  ;;  %v385_v21 = vpack.c.bf16 %v70_v17, %v69_v16  ;;  %v71_v22 = vld [vmem:[#allocation5 + $0x40] sm:$0xff]  ;;  %v163_v25 = vld [vmem:[#allocation7 + $0x30] sm:$0xff] }
  0x42   :  { %401 = vmatpush3.bf16.msra.mxu1 %v400_v15  ;;  %v72_v23 = vld [vmem:[#allocation5 + $0x48] sm:$0xff]  ;;  %v406_v24 = vpack.c.bf16 %v162_v20, %v161_v19  ;;  %v164_v26 = vld [vmem:[#allocation7 + $0x38] sm:$0xff]  ;;  %v73_v28 = vld [vmem:[#allocation5 + $0x50] sm:$0xff] }
  0x43   :  { %402 = vmatprep.subr.bf16.mxu1 %v539_v0  ;;  %v388_v27 = vpack.c.bf16 %v72_v23, %v71_v22  ;;  %v74_v29 = vld [vmem:[#allocation5 + $0x58] sm:$0xff]  ;;  %v409_v30 = vpack.c.bf16 %v164_v26, %v163_v25  ;;  %v165_v31 = vld [vmem:[#allocation7 + $0x40] sm:$0xff]  ;;  %v166_v32 = vld [vmem:[#allocation7 + $0x48] sm:$0xff] }
  0x44   :  { %380 = vmatpush3.bf16.msra.mxu0 %v379_v7  ;;  %v391_v33 = vpack.c.bf16 %v74_v29, %v73_v28  ;;  %v75_v34 = vld [vmem:[#allocation5 + $0x60] sm:$0xff]  ;;  %v76_v35 = vld [vmem:[#allocation5 + $0x68] sm:$0xff]  ;;  %v412_v36 = vpack.c.bf16 %v166_v32, %v165_v31  ;;  %v77_v38 = vld [vmem:[#allocation5 + $0x70] sm:$0xff] }
  0x45   :  { %381 = vmatprep.subr.bf16.mxu0 %v539_v0  ;;  %v394_v37 = vpack.c.bf16 %v76_v35, %v75_v34  ;;  %v78_v39 = vld [vmem:[#allocation5 + $0x78] sm:$0xff]  ;;  %v167_v42 = vld [vmem:[#allocation7 + $0x50] sm:$0xff]  ;;  %v169_v45 = vld [vmem:[#allocation7 + $0x60] sm:$0xff] }
  0x46   :  { %404 = vmatpush3.bf16.msra.mxu1 %v403_v18  ;;  %v397_v40 = vpack.c.bf16 %v78_v39, %v77_v38  ;;  %v62_v41 = vld [vmem:[#allocation2] sm:$0xff]  ;;  %v170_v46 = vld [vmem:[#allocation7 + $0x68] sm:$0xff]  ;;  %v171_v48 = vld [vmem:[#allocation7 + $0x70] sm:$0xff] }
  0x47   :  { %405 = vmatprep.subr.bf16.mxu1 %v539_v0  ;;  %v168_v43 = vld [vmem:[#allocation7 + $0x58] sm:$0xff]  ;;  %v418_v47 = vpack.c.bf16 %v170_v46, %v169_v45 }
  0x48   :  { %383 = vmatpush3.bf16.msra.mxu0 %v382_v14  ;;  %v415_v44 = vpack.c.bf16 %v168_v43, %v167_v42  ;;  %v172_v49 = vld [vmem:[#allocation7 + $0x78] sm:$0xff] }
  0x49   :  { %384 = vmatprep.subr.bf16.mxu0 %v539_v0  ;;  %v421_v50 = vpack.c.bf16 %v172_v49, %v171_v48  ;;  %v269_v51 = vld [vmem:[%s659_s2] ss:$0 sm:$0xff] }
  0x4a   :  { %407 = vmatpush3.bf16.msra.mxu1 %v406_v24  ;;  %v270_v56 = vld [vmem:[%s661_s4] ss:$0 sm:$0xff] }
  0x4b   :  { %408 = vmatprep.subr.bf16.mxu1 %v539_v0 }
  0x4c   :  { %386 = vmatpush3.bf16.msra.mxu0 %v385_v21 }
  0x4d   :  { %387 = vmatprep.subr.bf16.mxu0 %v539_v0 }
  0x4e   :  { %410 = vmatpush3.bf16.msra.mxu1 %v409_v30 }
  0x4f   :  { %411 = vmatprep.subr.bf16.mxu1 %v539_v0 }
  0x50   :  { %389 = vmatpush3.bf16.msra.mxu0 %v388_v27 }
  0x51   :  { %390 = vmatprep.subr.bf16.mxu0 %v539_v0 }
  0x52   :  { %413 = vmatpush3.bf16.msra.mxu1 %v412_v36 }
  0x53   :  { %414 = vmatprep.subr.bf16.mxu1 %v539_v0 }
  0x54   :  { %392 = vmatpush3.bf16.msra.mxu0 %v391_v33 }
  0x55   :  { %393 = vmatprep.subr.bf16.mxu0 %v539_v0 }
  0x56   :  { %416 = vmatpush3.bf16.msra.mxu1 %v415_v44 }
  0x57   :  { %417 = vmatprep.subr.bf16.mxu1 %v539_v0 }
  0x58   :  { %395 = vmatpush3.bf16.msra.mxu0 %v394_v37 }
  0x59   :  { %396 = vmatprep.subr.bf16.mxu0 %v539_v0 }
  0x5a   :  { %419 = vmatpush3.bf16.msra.mxu1 %v418_v47 }
  0x5b   :  { %420 = vmatprep.subr.bf16.mxu1 %v539_v0 }
  0x5c   :  { %398 = vmatpush3.bf16.msra.mxu0 %v397_v40 }
  0x5e   :  { %422 = vmatpush3.bf16.msra.mxu1 %v421_v50 }
  0x5f   :  { %338 = vmatmul.mubr.f32.vlgmr.msra.gmra.mrb[0].mxu0 %v62_v41 }
 0x132   :  { %v152_v52 = vpop.f32.mrb[0].mxu0 }
 0x133   :  { %v153_v53 = vadd.f32 %v269_v51, %v152_v52  ;;  %v339_v54 = vpop.f32.mrb[1].mxu0 }
 0x135   :  { %435 = vtanh.f32 %v153_v53 }
 0x13f   :  { %v436_v55 = vpop.eup %435 }
 0x140   :  { %373 = vmatmul.mubr.f32.vlgmr.msra.gmra.mrb[0].mxu1 %v436_v55 }
 0x213   :  { %v246_v57 = vpop.f32.mrb[0].mxu1 }
 0x214   :  { %v247_v58 = vadd.f32 %v270_v56, %v246_v57  ;;  %v374_v59 = vpop.f32.mrb[1].mxu1 }
 0x216   :  { %250 = vst [vmem:[#allocation8] sm:$0xff] %v247_v58 }
 0x217   :  { %255 = vsyncadd [#allocation4], 96  ;;  %s542_s14 = smov [#allocation8]  }
 0x218   :  { %s256_s15 = sshll.u32 %s542_s14, 4  ;;  %s257_s15 = int_to_ptr.vmem [resolvable:$true] %s256_s15 }
 0x219   :  { %s503_s16 = scalar_lea.vmem %s257_s15, 32  ;;  %s507_s2 = scalar_lea.vmem %s257_s15, 128 }
 0x21a   :  { %p504_p12 = scmp.ne.s32.totalorder %s257_s15, %s503_s16  ;;  %p508_p13 = scmp.lt.s32.totalorder %s257_s15, %s257_s15 }
 0x21b   :  { %p509_p0 = scmp.lt.s32.totalorder %s507_s2, %s503_s16 }
 0x21d   :  { %p510_p1 = por %p509_p0, %p508_p13 }
 0x21f   :  { %p511_p2 = pnand %p510_p1, %p504_p12 }
 0x221   :  { %514 = shalt.err (!%p511_p2)
}
 0x222   :  { %s515_s4 = scalar_lea.hbm %s662_s5, 32 }
 0x223   :  { %p516_p3 = scmp.ne.s32.totalorder %s662_s5, %s515_s4  ;;  %p519_p4 = scmp.lt.u32.totalorder %s515_s4, %s662_s5 }
 0x225   :  { %p521_p5 = pnand %p519_p4, %p516_p3 }
 0x227   :  { %524 = shalt.err (!%p521_p5)
}
 0x228   :  { %262 = dma.vmem_to_hbm [thread:$0]  %s257_s15, 32, %s662_s5, [#allocation4], %s536_s21, %s536_s21, %s537_s22  }
 0x229   :  { %529 = dma.done.wait [#allocation4], 128  }
 0x22a   :  { %530 = vsyncadd [#allocation4], 4294967168 }
 0x22b   :  { %266 = vsyncpa [#allocation3], 1 }
 0x22c   :  { %267 = vsyncpa [#allocation6], 1 }
 0x22d   :  { %268 = vsyncpa [#allocation4], 1 }

</bundles_post_ra>
